<compile_context>
chip_gen: v6e
topology: v6e:2x2x1
jax: 0.10.0
libtpu: 0.0.40
codegen_flags: <defaults>
</compile_context>

<pallas_src>
import functools
import math

import jax
import jax.numpy as jnp
from jax.experimental import pallas as pl
from jax.experimental.pallas import tpu as pltpu


# ----------------------------- Pallas kernels ------------------------------

def _matmul_kernel(x_ref, w_ref, o_ref):
    """Plain y = x @ w (used only for the tiny r_net projection)."""
    o_ref[...] = jnp.dot(x_ref[...], w_ref[...], preferred_element_type=jnp.float32)


def _ln_matmul_kernel(x_ref, g_ref, b_ref, w_ref, o_ref):
    """y = LayerNorm(x; g, b) @ w  -- fused LN + QKV projection, one row-tile per step."""
    x = x_ref[...]
    mean = jnp.mean(x, axis=-1, keepdims=True)
    var = jnp.mean((x - mean) ** 2, axis=-1, keepdims=True)
    xn = (x - mean) * jax.lax.rsqrt(var + 1e-5)
    h = xn * g_ref[...] + b_ref[...]
    o_ref[...] = jnp.dot(h, w_ref[...], preferred_element_type=jnp.float32)


def _rel_attn_kernel(scale, n_head, d_head,
                     wh_ref, rk_ref, rwb_ref, rrb_ref, mask_ref, o_ref):
    """Fused relative attention for one batch element, all heads.

    wh_ref:   (1, qlen, 3*H*Dh)  concatenated q|k|v heads
    rk_ref:   (rlen, H*Dh)       projected relative position embeddings
    rwb/rrb:  (1, H*Dh)          r_w_bias / r_r_bias flattened
    mask_ref: (qlen, klen) int32 nonzero == masked
    o_ref:    (1, qlen, H*Dh)    attention output (heads concatenated, lane-dense store)
    """
    hdh = n_head * d_head
    wh = wh_ref[0]                                   # (qlen, 3*hdh)
    qlen = wh.shape[0]
    rk = rk_ref[...]                                 # (rlen, hdh)
    klen = mask_ref.shape[1]
    masked = mask_ref[...] != 0                      # (qlen, klen)
    row_idx = jax.lax.broadcasted_iota(jnp.int32, (qlen, klen), 0)

    dn_t = (((1,), (1,)), ((), ()))                  # x @ y.T (contract feature dims)
    dn_n = (((1,), (0,)), ((), ()))                  # x @ y

    outs = []
    for h in range(n_head):                          # static unroll over heads
        lo, hi = h * d_head, (h + 1) * d_head
        qh = wh[:, lo:hi]                            # (qlen, d_head)
        kh = wh[:, hdh + lo:hdh + hi]                # (klen, d_head)
        vh = wh[:, 2 * hdh + lo:2 * hdh + hi]        # (klen, d_head)
        rkh = rk[:, lo:hi]                           # (rlen, d_head)
        rwb = rwb_ref[:, lo:hi]                      # (1, d_head)
        rrb = rrb_ref[:, lo:hi]

        ac = jax.lax.dot_general(qh + rwb, kh, dn_t,
                                 preferred_element_type=jnp.float32)   # (qlen, klen)
        bd = jax.lax.dot_general(qh + rrb, rkh, dn_t,
                                 preferred_element_type=jnp.float32)   # (qlen, rlen)

        # In-kernel Transformer-XL rel-shift: shifted[i, j] = bd[i, j + klen - 1 - i].
        # Positions j > i land on zero-padding / spill values and are masked below.
        # TODO(synk): for long sequences replace the unrolled remap with a strided pltpu.roll.
        if klen > 1:
            bdp = jnp.concatenate(
                [bd, jnp.zeros((qlen, klen - 1), jnp.float32)], axis=1)  # (qlen, 2*klen-1)
        else:
            bdp = bd
        bd_sh = jnp.zeros((qlen, klen), jnp.float32)
        for i in range(qlen):
            bd_sh = jnp.where(row_idx == i,
                              bdp[:, klen - 1 - i:2 * klen - 1 - i], bd_sh)

        s = (ac + bd_sh) * scale
        s = jnp.where(masked, -1e30, s)              # large-finite avoids NaN on full-mask rows
        m = jnp.max(s, axis=-1, keepdims=True)
        e = jnp.exp(s - m)
        p = e * pl.reciprocal(jnp.sum(e, axis=-1, keepdims=True), approx=True)
        outs.append(jax.lax.dot_general(p, vh, dn_n,
                                        preferred_element_type=jnp.float32))

    o_ref[0] = jnp.concatenate(outs, axis=1)         # single lane-dense (qlen, hdh) store


def _out_ffn_kernel(a_ref, wo_ref, res_ref, g_ref, b_ref,
                    w1_ref, b1_ref, w2_ref, b2_ref, o_ref):
    """o_net projection + residual, then PositionwiseFF (pre-norm) + residual, fused."""
    # attention block output  (dropout == identity in eval)
    h1 = jnp.dot(a_ref[...], wo_ref[...],
                 preferred_element_type=jnp.float32) + res_ref[...]
    # PositionwiseFF: Linear(ReLU(Linear(LayerNorm(h1)))) + h1
    # TODO(synk): at realistic d_inner, tile d_inner (N/K) here to fit v7x's 64 MiB VMEM.
    mean = jnp.mean(h1, axis=-1, keepdims=True)
    var = jnp.mean((h1 - mean) ** 2, axis=-1, keepdims=True)
    xn = (h1 - mean) * jax.lax.rsqrt(var + 1e-5) * g_ref[...] + b_ref[...]
    hh = jnp.maximum(
        jnp.dot(xn, w1_ref[...], preferred_element_type=jnp.float32) + b1_ref[...], 0.0)
    o_ref[...] = (jnp.dot(hh, w2_ref[...], preferred_element_type=jnp.float32)
                  + b2_ref[...] + h1)


# ------------------------------ wrapper --------------------------------------

def _row_block(m, target=256):
    """Largest row block <= target that tiles m (multiple of 8), else the full m."""
    if m <= target:
        return m
    for b in range(target, 7, -8):
        if m % b == 0:
            return b
    return m


def rel_partial_decoder_layer(params, dec_inp, r, r_w_bias, r_r_bias,
                              dec_attn_mask=None, mems=None, *,
                              n_head, d_head):
    # TODO(synk): mems (segment-recurrence cache) path not implemented; mems=None only.
    assert mems is None
    qlen, bsz, d_model = dec_inp.shape
    rlen = r.shape[0]
    klen = qlen
    assert rlen == klen, "mems=None path requires rlen == klen == qlen"
    hdh = n_head * d_head
    scale = 1.0 / math.sqrt(d_head)
    rows = bsz * qlen
    bm = _row_block(rows)
    d_inner = params["w1"].shape[1]

    # Single layout change to batch-major (bsz, qlen, d_model); undone at the end.
    x = jnp.transpose(dec_inp, (1, 0, 2)).reshape(rows, d_model)

    # 1) fused LayerNorm + QKV projection, tiled over rows.
    w_heads = pl.pallas_call(
        _ln_matmul_kernel,
        grid=(rows // bm,),
        in_specs=[pl.BlockSpec((bm, d_model), lambda i: (i, 0)),
                  pl.BlockSpec((1, d_model), lambda i: (0, 0)),
                  pl.BlockSpec((1, d_model), lambda i: (0, 0)),
                  pl.BlockSpec((d_model, 3 * hdh), lambda i: (0, 0))],
        out_specs=pl.BlockSpec((bm, 3 * hdh), lambda i: (i, 0)),
        out_shape=jax.ShapeDtypeStruct((rows, 3 * hdh), jnp.float32),
        compiler_params=pltpu.CompilerParams(dimension_semantics=("parallel",)),
    )(x, params["attn_ln_g"], params["attn_ln_b"], params["w_qkv"])
    w_heads = w_heads.reshape(bsz, qlen, 3 * hdh)

    # 2) r_net projection (tiny).
    r_head_k = pl.pallas_call(
        _matmul_kernel,
        out_shape=jax.ShapeDtypeStruct((rlen, hdh), jnp.float32),
    )(r, params["w_r"])

    # 3) fused relative attention: scores + rel-shift + mask + softmax + P@V per batch element.
    if dec_attn_mask is None:
        mask_i32 = jnp.zeros((qlen, klen), jnp.int32)
    else:
        mask_i32 = dec_attn_mask.astype(jnp.int32)
    rwb = r_w_bias.reshape(1, hdh)
    rrb = r_r_bias.reshape(1, hdh)
    attn_vec = pl.pallas_call(
        functools.partial(_rel_attn_kernel, scale, n_head, d_head),
        grid=(bsz,),
        in_specs=[pl.BlockSpec((1, qlen, 3 * hdh), lambda b: (b, 0, 0)),
                  pl.BlockSpec((rlen, hdh), lambda b: (0, 0)),
                  pl.BlockSpec((1, hdh), lambda b: (0, 0)),
                  pl.BlockSpec((1, hdh), lambda b: (0, 0)),
                  pl.BlockSpec((qlen, klen), lambda b: (0, 0))],
        out_specs=pl.BlockSpec((1, qlen, hdh), lambda b: (b, 0, 0)),
        out_shape=jax.ShapeDtypeStruct((bsz, qlen, hdh), jnp.float32),
        compiler_params=pltpu.CompilerParams(dimension_semantics=("parallel",)),
    )(w_heads, r_head_k, rwb, rrb, mask_i32)

    # 4) o_net + residual + PositionwiseFF + residual, fused & tiled over rows.
    attn2d = attn_vec.reshape(rows, hdh)
    out = pl.pallas_call(
        _out_ffn_kernel,
        grid=(rows // bm,),
        in_specs=[pl.BlockSpec((bm, hdh), lambda i: (i, 0)),
                  pl.BlockSpec((hdh, d_model), lambda i: (0, 0)),
                  pl.BlockSpec((bm, d_model), lambda i: (i, 0)),      # residual = dec_inp
                  pl.BlockSpec((1, d_model), lambda i: (0, 0)),
                  pl.BlockSpec((1, d_model), lambda i: (0, 0)),
                  pl.BlockSpec((d_model, d_inner), lambda i: (0, 0)),
                  pl.BlockSpec((1, d_inner), lambda i: (0, 0)),
                  pl.BlockSpec((d_inner, d_model), lambda i: (0, 0)),
                  pl.BlockSpec((1, d_model), lambda i: (0, 0))],
        out_specs=pl.BlockSpec((bm, d_model), lambda i: (i, 0)),
        out_shape=jax.ShapeDtypeStruct((rows, d_model), jnp.float32),
        compiler_params=pltpu.CompilerParams(dimension_semantics=("parallel",)),
    )(attn2d, params["w_o"], x, params["ff_ln_g"], params["ff_ln_b"],
      params["w1"], params["b1"], params["w2"], params["b2"])

    return jnp.transpose(out.reshape(bsz, qlen, d_model), (1, 0, 2))


# ------------------------------ params ---------------------------------------

def init_params(key, n_head, d_model, d_head, d_inner):
    ks = jax.random.split(key, 12)
    s = 0.1

    def nrm(k, shape):
        return (s * jax.random.normal(k, shape)).astype(jnp.float32)

    return dict(
        # attention (weights stored as (in, out); PyTorch Linear weight is (out, in))
        w_qkv=nrm(ks[0], (d_model, 3 * n_head * d_head)),   # qkv_net (bias=False)
        w_r=nrm(ks[1], (d_model, n_head * d_head)),         # r_net   (bias=False)
        w_o=nrm(ks[2], (n_head * d_head, d_model)),         # o_net   (bias=False)
        attn_ln_g=(1.0 + 0.05 * jax.random.normal(ks[3], (1, d_model))).astype(jnp.float32),
        attn_ln_b=(0.05 * jax.random.normal(ks[4], (1, d_model))).astype(jnp.float32),
        # PositionwiseFF
        ff_ln_g=(1.0 + 0.05 * jax.random.normal(ks[5], (1, d_model))).astype(jnp.float32),
        ff_ln_b=(0.05 * jax.random.normal(ks[6], (1, d_model))).astype(jnp.float32),
        w1=nrm(ks[7], (d_model, d_inner)),
        b1=nrm(ks[8], (1, d_inner)),
        w2=nrm(ks[9], (d_inner, d_model)),
        b2=nrm(ks[10], (1, d_model)),
    )


# ------------------------- pure-JAX reference check -------------------------

def reference_forward(params, dec_inp, r, r_w_bias, r_r_bias, dec_attn_mask,
                      n_head, d_head):
    qlen, bsz, d_model = dec_inp.shape
    rlen = r.shape[0]
    scale = 1.0 / math.sqrt(d_head)
    hdh = n_head * d_head

    def ln(x, g, b):
        m = jnp.mean(x, -1, keepdims=True)
        v = jnp.mean((x - m) ** 2, -1, keepdims=True)
        return (x - m) / jnp.sqrt(v + 1e-5) * g.reshape(-1) + b.reshape(-1)

    h = ln(dec_inp, params["attn_ln_g"], params["attn_ln_b"])
    w_heads = h @ params["w_qkv"]
    r_head_k = (r @ params["w_r"]).reshape(rlen, n_head, d_head)
    w_head_q = w_heads[..., :hdh].reshape(qlen, bsz, n_head, d_head)
    w_head_k = w_heads[..., hdh:2 * hdh].reshape(qlen, bsz, n_head, d_head)
    w_head_v = w_heads[..., 2 * hdh:].reshape(qlen, bsz, n_head, d_head)
    AC = jnp.einsum('ibnd,jbnd->ijbn', w_head_q + r_w_bias, w_head_k)
    BD = jnp.einsum('ibnd,jnd->ijbn', w_head_q + r_r_bias, r_head_k)
    zero_pad = jnp.zeros((qlen, 1, bsz, n_head), BD.dtype)
    BD_p = jnp.concatenate([zero_pad, BD], axis=1).reshape(rlen + 1, qlen, bsz, n_head)
    BD = BD_p[1:].reshape(qlen, rlen, bsz, n_head)
    score = (AC + BD) * scale
    if dec_attn_mask is not None:
        score = jnp.where(dec_attn_mask[:, :, None, None], -jnp.inf, score)
    prob = jax.nn.softmax(score, axis=1)
    attn_vec = jnp.einsum('ijbn,jbnd->ibnd', prob, w_head_v).reshape(qlen, bsz, hdh)
    out = attn_vec @ params["w_o"] + dec_inp
    h2 = ln(out, params["ff_ln_g"], params["ff_ln_b"])
    core = jnp.maximum(h2 @ params["w1"] + params["b1"].reshape(-1), 0.0) \
        @ params["w2"] + params["b2"].reshape(-1)
    return core + out


# ---------------------------------- main -------------------------------------

if __name__ == "__main__":
    n_head, d_model, d_head, d_inner = 2, 32, 16, 64
    qlen, bsz = 8, 2

    key = jax.random.PRNGKey(0)
    k1, k2, k3, k4, k5 = jax.random.split(key, 5)
    params = init_params(k1, n_head, d_model, d_head, d_inner)

    dec_inp = jax.random.normal(k2, (qlen, bsz, d_model), jnp.float32)
    r = jax.random.normal(k3, (qlen, d_model), jnp.float32)
    r_w_bias = 0.1 * jax.random.normal(k4, (n_head, d_head), jnp.float32)
    r_r_bias = 0.1 * jax.random.normal(k5, (n_head, d_head), jnp.float32)
    dec_attn_mask = jnp.triu(jnp.ones((qlen, qlen), jnp.bool_), k=1)  # causal

    out = rel_partial_decoder_layer(params, dec_inp, r, r_w_bias, r_r_bias,
                                    dec_attn_mask=dec_attn_mask, mems=None,
                                    n_head=n_head, d_head=d_head)
    out = jax.block_until_ready(out)

    ref = reference_forward(params, dec_inp, r, r_w_bias, r_r_bias, dec_attn_mask,
                            n_head, d_head)
    assert out.shape == (qlen, bsz, d_model)
    max_err = float(jnp.max(jnp.abs(out - ref)))
    assert jnp.allclose(out, ref, rtol=2e-2, atol=2e-2), max_err
    print("KERNEL_OK")
</pallas_src>

<mosaic_0001>
module attributes {stable_mosaic.version = 11 : i64} {
  func.func @_ln_matmul_kernel(%arg0: i32, %arg1: memref<16x32xf32, #tpu.memory_space<vmem>>, %arg2: memref<1x32xf32, #tpu.memory_space<vmem>>, %arg3: memref<1x32xf32, #tpu.memory_space<vmem>>, %arg4: memref<32x96xf32, #tpu.memory_space<vmem>>, %arg5: memref<16x96xf32, #tpu.memory_space<vmem>>) attributes {dimension_semantics = [#tpu.dimension_semantics<parallel>], iteration_bounds = array<i64: 1>, scalar_prefetch = 0 : i64, scratch_operands = 0 : i64, tpu.core_type = #tpu.core_type<tc>, window_params = [{transform_indices = @transform_0, window_bounds = array<i64: 16, 32>}, {pipeline_mode = #tpu.pipeline_mode<synchronous>, transform_indices = @transform_1, window_bounds = array<i64: 1, 32>}, {pipeline_mode = #tpu.pipeline_mode<synchronous>, transform_indices = @transform_2, window_bounds = array<i64: 1, 32>}, {pipeline_mode = #tpu.pipeline_mode<synchronous>, transform_indices = @transform_3, window_bounds = array<i64: 32, 96>}, {transform_indices = @transform_4, window_bounds = array<i64: 16, 96>}]} {
    %c0 = arith.constant 0 : index
    %c0_0 = arith.constant 0 : index
    %0 = vector.load %arg1[%c0, %c0_0] : memref<16x32xf32, #tpu.memory_space<vmem>>, vector<16x32xf32>
    %cst = arith.constant dense<0.000000e+00> : vector<16xf32>
    %1 = vector.multi_reduction <add>, %0, %cst [1] : vector<16x32xf32> to vector<16xf32>
    %2 = vector.shape_cast %1 : vector<16xf32> to vector<16x1xf32>
    %cst_1 = arith.constant 3.200000e+01 : f32
    %3 = vector.broadcast %cst_1 : f32 to vector<16x1xf32>
    %4 = arith.divf %2, %3 : vector<16x1xf32>
    %5 = vector.broadcast %4 : vector<16x1xf32> to vector<16x32xf32>
    %6 = arith.subf %0, %5 : vector<16x32xf32>
    %7 = arith.mulf %6, %6 : vector<16x32xf32>
    %cst_2 = arith.constant dense<0.000000e+00> : vector<16xf32>
    %8 = vector.multi_reduction <add>, %7, %cst_2 [1] : vector<16x32xf32> to vector<16xf32>
    %9 = vector.shape_cast %8 : vector<16xf32> to vector<16x1xf32>
    %cst_3 = arith.constant 3.200000e+01 : f32
    %10 = vector.broadcast %cst_3 : f32 to vector<16x1xf32>
    %11 = arith.divf %9, %10 : vector<16x1xf32>
    %12 = vector.broadcast %4 : vector<16x1xf32> to vector<16x32xf32>
    %13 = arith.subf %0, %12 : vector<16x32xf32>
    %cst_4 = arith.constant 9.99999974E-6 : f32
    %14 = vector.broadcast %cst_4 : f32 to vector<16x1xf32>
    %15 = arith.addf %11, %14 : vector<16x1xf32>
    %16 = math.rsqrt %15 : vector<16x1xf32>
    %17 = vector.broadcast %16 : vector<16x1xf32> to vector<16x32xf32>
    %18 = arith.mulf %13, %17 : vector<16x32xf32>
    %c0_5 = arith.constant 0 : index
    %c0_6 = arith.constant 0 : index
    %19 = vector.load %arg2[%c0_5, %c0_6] : memref<1x32xf32, #tpu.memory_space<vmem>>, vector<1x32xf32>
    %20 = vector.broadcast %19 : vector<1x32xf32> to vector<16x32xf32>
    %21 = arith.mulf %18, %20 : vector<16x32xf32>
    %c0_7 = arith.constant 0 : index
    %c0_8 = arith.constant 0 : index
    %22 = vector.load %arg3[%c0_7, %c0_8] : memref<1x32xf32, #tpu.memory_space<vmem>>, vector<1x32xf32>
    %23 = vector.broadcast %22 : vector<1x32xf32> to vector<16x32xf32>
    %24 = arith.addf %21, %23 : vector<16x32xf32>
    %c0_9 = arith.constant 0 : index
    %c0_10 = arith.constant 0 : index
    %25 = vector.load %arg4[%c0_9, %c0_10] : memref<32x96xf32, #tpu.memory_space<vmem>>, vector<32x96xf32>
    %cst_11 = arith.constant dense<0.000000e+00> : vector<16x96xf32>
    %26 = tpu.matmul %24, %25, %cst_11 {dimension_numbers = #tpu.dot_dimension_numbers<[1], [0], [0], [1], [0, 0, 1, 1], [], []>} : vector<16x32xf32>, vector<32x96xf32>, vector<16x96xf32> -> vector<16x96xf32>
    %c0_12 = arith.constant 0 : index
    %c0_13 = arith.constant 0 : index
    %27 = vector.load %arg5[%c0_12, %c0_13] : memref<16x96xf32, #tpu.memory_space<vmem>>, vector<16x96xf32>
    tpu.vector_store %arg5[%c0_12, %c0_13], %26 {strides = array<i32>} : memref<16x96xf32, #tpu.memory_space<vmem>>, vector<16x96xf32>,
    return
  }
  func.func @transform_0(%arg0: i32) -> (i32, i32) {
    %c0_i32 = arith.constant 0 : i32
    %c0_i32_0 = arith.constant 0 : i32
    return %arg0, %c0_i32 : i32, i32
  }
  func.func @transform_1(%arg0: i32) -> (i32, i32) {
    %c0_i32 = arith.constant 0 : i32
    %c0_i32_0 = arith.constant 0 : i32
    %c0_i32_1 = arith.constant 0 : i32
    return %c0_i32, %c0_i32_0 : i32, i32
  }
  func.func @transform_2(%arg0: i32) -> (i32, i32) {
    %c0_i32 = arith.constant 0 : i32
    %c0_i32_0 = arith.constant 0 : i32
    %c0_i32_1 = arith.constant 0 : i32
    return %c0_i32, %c0_i32_0 : i32, i32
  }
  func.func @transform_3(%arg0: i32) -> (i32, i32) {
    %c0_i32 = arith.constant 0 : i32
    %c0_i32_0 = arith.constant 0 : i32
    %c0_i32_1 = arith.constant 0 : i32
    return %c0_i32, %c0_i32_0 : i32, i32
  }
  func.func @transform_4(%arg0: i32) -> (i32, i32) {
    %c0_i32 = arith.constant 0 : i32
    %c0_i32_0 = arith.constant 0 : i32
    return %arg0, %c0_i32 : i32, i32
  }
}

</mosaic_0001>

<bundles_post_ra>
// kernel: tpu_custom_call.1
= control target key start
LH: loop header
LB: loop body
LE: loop exit
PB: predicated region body
PF: predicated region fallthrough
CT: control target
= control target key end

     0   :  { %9 = vsyncpa [#allocation3], 0  ;;  %s356_s0 = inlined_call_operand.hbm [shape: f32[16,32], index: 0, kind: input, shape index: {}]   ;;  %s357_s1 = inlined_call_operand.vmem [shape: f32[1,32], index: 1, kind: input, shape index: {}]   ;;  %s358_s2 = inlined_call_operand.vmem [shape: f32[1,32], index: 2, kind: input, shape index: {}]   ;;  %s359_s3 = inlined_call_operand.hbm [shape: f32[32,96], index: 3, kind: input, shape index: {}]   ;;  %s360_s4 = inlined_call_operand.hbm [shape: f32[16,96], index: 4, kind: output, shape index: {}]  }
   0x1   :  { %10 = vsyncpa [#allocation6], 0 }
   0x2   :  { %11 = vsyncpa [#allocation4], 0  ;;  %s296_s15 = smov [#allocation2]  }
   0x3   :  { %s17_s16 = sshll.u32 %s296_s15, 4  ;;  %s18_s16 = int_to_ptr.vmem [resolvable:$true] %s17_s16 }
   0x4   :  { %s238_s17 = scalar_lea.vmem %s18_s16, 256  ;;  %p243_p1 = scmp.lt.s32.totalorder %s18_s16, %s18_s16 }
   0x5   :  { %p239_p0 = scmp.ne.s32.totalorder %s18_s16, %s238_s17  ;;  %p244_p2 = scmp.lt.s32.totalorder %s238_s17, %s238_s17 }
   0x7   :  { %p245_p3 = por %p244_p2, %p243_p1 }
   0x9   :  { %p246_p4 = pnand %p245_p3, %p239_p0 }
   0xb   :  { %249 = shalt.err (!%p246_p4)
}
   0xc   :  { %s297_s18 = smov 128   ;;  %s298_s19 = smov 8  }
   0xd   :  { %23 = dma.hbm_to_vmem [thread:$0]  %s356_s0, 256, %s18_s16, [#allocation3], %s297_s18, %s297_s18, %s298_s19  }
   0xe   :  { %s299_s22 = smov [#allocation5]  }
   0xf   :  { %s33_s23 = sshll.u32 %s299_s22, 4  ;;  %s34_s23 = int_to_ptr.vmem [resolvable:$true] %s33_s23 }
  0x10   :  { %s258_s24 = scalar_lea.vmem %s34_s23, 512  ;;  %p263_p6 = scmp.lt.s32.totalorder %s34_s23, %s34_s23 }
  0x11   :  { %p259_p5 = scmp.ne.s32.totalorder %s34_s23, %s258_s24  ;;  %p264_p7 = scmp.lt.s32.totalorder %s258_s24, %s258_s24 }
  0x13   :  { %p265_p8 = por %p264_p7, %p263_p6 }
  0x15   :  { %p266_p9 = pnand %p265_p8, %p259_p5 }
  0x17   :  { %269 = shalt.err (!%p266_p9)
}
  0x18   :  { %39 = dma.hbm_to_vmem [thread:$0]  %s359_s3, 512, %s34_s23, [#allocation6], %s297_s18, %s297_s18, %s298_s19  }
  0x19   :  { %290 = dma.done.wait [#allocation3], 256  }
  0x1a   :  { %291 = vsyncadd [#allocation3], 4294967040 }
  0x1b   :  { %292 = dma.done.wait [#allocation6], 512  }
  0x1c   :  { %293 = vsyncadd [#allocation6], 4294966784  ;;  %vm48_vm0 = vcmask 261120   ;;  %v46_v0 = vld [vmem:[#allocation2] sm:$0xff]  ;;  %v47_v1 = vld [vmem:[#allocation2 + $0x8] sm:$0xff]  ;;  %vm179_vm1 = vcmask 785408  }
  0x1d   :  { %v49_v2 = vsel %vm48_vm0, %v46_v0, 0.0  ;;  %v52_v3 = vsel %vm48_vm0, %v47_v1, 0.0  ;;  %v97_v14 = vld [vmem:[#allocation5 + $0x18] sm:$0xff]  ;;  %v96_v15 = vld [vmem:[#allocation5 + $0x10] sm:$0xff]  ;;  %v95_v16 = vld [vmem:[#allocation5 + $0x8] sm:$0xff]  ;;  %s300_s29 = smov [#allocation7]  }
  0x1e   :  { %50 = vadd.xlane.f32.xlu0 %v49_v2  ;;  %210 = vmatprep.subr.mxu0 %v97_v14  ;;  %v94_v17 = vld [vmem:[#allocation5] sm:$0xff]  ;;  %v200_v25 = vld [vmem:[%s357_s1] ss:$0 sm:$0xff]  ;;  %s187_s30 = sshll.u32 %s300_s29, 4  ;;  %s188_s30 = int_to_ptr.vmem [resolvable:$true] %s187_s30 }
  0x1f   :  { %211 = vmatpush3.msra.mxu0 %v97_v14  ;;  %v201_v27 = vld [vmem:[%s358_s2] ss:$0 sm:$0xff]  ;;  %s270_s1 = scalar_lea.vmem %s188_s30, 256  ;;  %p275_p11 = scmp.lt.s32.totalorder %s188_s30, %s188_s30 }
  0x20   :  { %212 = vmatprep.subr.mxu0 %v96_v15  ;;  %p271_p10 = scmp.ne.s32.totalorder %s188_s30, %s270_s1  ;;  %p276_p12 = scmp.lt.s32.totalorder %s270_s1, %s270_s1 }
  0x21   :  { %213 = vmatpush3.msra.mxu0 %v96_v15 }
  0x22   :  { %53 = vadd.xlane.f32.xlu0 %v52_v3  ;;  %214 = vmatprep.subr.mxu0 %v95_v16  ;;  %p277_p13 = por %p276_p12, %p275_p11 }
  0x23   :  { %215 = vmatpush3.msra.mxu0 %v95_v16 }
  0x24   :  { %216 = vmatprep.subr.mxu0 %v94_v17  ;;  %p278_p0 = pnand %p277_p13, %p271_p10 }
  0x25   :  { %217 = vmatpush3.msra.mxu0 %v94_v17 }
  0xa7   :  { %v51_v4 = vpop.xlane.xlu0 %50 }
  0xa8   :  { %v56_v5 = vmul.f32 0.03125, %v51_v4 }
  0xaa   :  { %v58_v6 = vsub.f32 %v46_v0, %v56_v5 }
  0xab   :  { %v54_v7 = vpop.xlane.xlu0 %53 }
  0xac   :  { %v57_v8 = vmul.f32 0.03125, %v54_v7  ;;  %v60_v9 = vmul.f32 %v58_v6, %v58_v6 }
  0xae   :  { %v59_v10 = vsub.f32 %v47_v1, %v57_v8  ;;  %v62_v11 = vsel %vm48_vm0, %v60_v9, 0.0 }
  0xaf   :  { %63 = vadd.xlane.f32.xlu1 %v62_v11 }
  0xb0   :  { %v61_v12 = vmul.f32 %v59_v10, %v59_v10 }
  0xb2   :  { %v65_v13 = vsel %vm48_vm0, %v61_v12, 0.0 }
  0xb3   :  { %66 = vadd.xlane.f32.xlu1 %v65_v13 }
 0x138   :  { %v64_v18 = vpop.xlane.xlu1 %63 }
 0x139   :  { %v68_v19 = vmul.f32 0.03125, %v64_v18 }
 0x13b   :  { %v70_v20 = vadd.f32 1e-05, %v68_v19 }
 0x13c   :  { %v67_v21 = vpop.xlane.xlu1 %66 }
 0x13d   :  { %226 = vrsqrt.f32 %v70_v20  ;;  %v69_v22 = vmul.f32 0.03125, %v67_v21 }
 0x13f   :  { %v71_v23 = vadd.f32 1e-05, %v69_v22 }
 0x141   :  { %228 = vrsqrt.f32 %v71_v23 }
 0x14a   :  { %v227_v24 = vpop.eup %226 }
 0x14b   :  { %v74_v26 = vmul.f32 %v227_v24, %v58_v6 }
 0x14d   :  { %v83_v28 = vmul.f32 %v200_v25, %v74_v26 }
 0x14e   :  { %v229_v29 = vpop.eup %228 }
 0x14f   :  { %v75_v30 = vmul.f32 %v229_v29, %v59_v10  ;;  %v92_v31 = vadd.f32 %v201_v27, %v83_v28 }
 0x151   :  { %v84_v32 = vmul.f32 %v200_v25, %v75_v30  ;;  %218 = vmatprep.mubr.msk.f32.mxu0 %vm48_vm0, %v92_v31 }
 0x153   :  { %v93_v33 = vadd.f32 %v201_v27, %v84_v32 }
 0x155   :  { %219 = vmatmul.mubr.msk.f32.vlgmr.msra.gmra.mxu0 %vm48_vm0, %v93_v33 }
 0x215   :  { %v220_v34 = vpop.f32.mrf.mxu0 }
 0x216   :  { %181 = vst.msk [vmem:[#allocation7 + $0x8] sm:$0xff] %vm179_vm1, %v220_v34 }
 0x217   :  { %v170_v35 = vpop.f32.mrf.mxu0 }
 0x218   :  { %180 = vst.msk [vmem:[#allocation7] sm:$0xff] %vm179_vm1, %v170_v35 }
 0x219   :  { %281 = shalt.err (!%p278_p0)
}
 0x21a   :  { %193 = dma.vmem_to_hbm [thread:$0]  %s188_s30, 256, %s360_s4, [#allocation4], %s297_s18, %s297_s18, %s298_s19  }
 0x21b   :  { %294 = dma.done.wait [#allocation4], 256  }
 0x21c   :  { %295 = vsyncadd [#allocation4], 4294967040 }
 0x21d   :  { %197 = vsyncpa [#allocation3], 1 }
 0x21e   :  { %198 = vsyncpa [#allocation6], 1 }
 0x21f   :  { %199 = vsyncpa [#allocation4], 1 }

</bundles_post_ra>
